<compile_context>
chip_gen: v7x
topology: tpu7x:2x2x1
jax: 0.10.0
libtpu: 0.0.40
codegen_flags: <defaults>
</compile_context>

<pallas_src>
import functools

import jax
import jax.numpy as jnp
from jax.experimental import pallas as pl
from jax.experimental.pallas import tpu as pltpu


def _round_up(x, m):
    return ((x + m - 1) // m) * m


def _signloss_kernel(wm_ref, w_ref, out_ref, acc_ref, *, tap, tile_o, inner, o_total):
    # wm_ref : (tile_o, 1)          watermark_sign rows for this tile (native dtype)
    # w_ref  : (tile_o, C*kH*kW)    flattened conv-weight rows (native dtype)
    # out_ref: (1, 8, 128)          per-split partial loss (broadcast scalar)
    # acc_ref: (1, 1) f32 scratch   running hinge sum for this split
    split = pl.program_id(0)
    i = pl.program_id(1)

    @pl.when(i == 0)
    def _():
        acc_ref[...] = jnp.zeros_like(acc_ref)

    w = w_ref[...].astype(jnp.float32)                      # cast in-vreg (free on VPU)
    # Select the (kh=0, kw=0) tap of every input channel: lanes where lane % (kH*kW) == 0.
    lane = jax.lax.broadcasted_iota(jnp.int32, w.shape, 1)
    w_tap = jnp.where((lane % tap) == 0, w, jnp.float32(0.0))
    weight_sign = jnp.sum(w_tap, axis=1, keepdims=True)     # (tile_o, 1) == sum_c w[o,c,0,0]

    wm = wm_ref[...].astype(jnp.float32)                    # (tile_o, 1)
    hinge = jnp.maximum(-wm * weight_sign + jnp.float32(0.1), jnp.float32(0.0))

    # Mask rows beyond O (partial last block or overshooting split).  Use the
    # UNCLAMPED global row index so clamped duplicate blocks contribute zero.
    row0 = (split * inner + i) * tile_o
    row = row0 + jax.lax.broadcasted_iota(jnp.int32, (tile_o, 1), 0)
    hinge = jnp.where(row < o_total, hinge, jnp.float32(0.0))

    acc_ref[...] += jnp.sum(hinge, keepdims=True)           # (1, 1)

    @pl.when(i == pl.num_programs(1) - 1)
    def _():
        out_ref[...] = jnp.broadcast_to(jnp.float32(0.1) * acc_ref[...], out_ref.shape)


def sign_loss(watermark_sign, weight, alpha=0, *, max_tile_o=512, num_splits=2):
    """watermark_sign: anything that flattens to [O]; weight: [O, C, kH, kW]."""
    del alpha  # unused in the reference forward
    O, C, kH, kW = weight.shape
    tap = kH * kW
    L = C * tap

    # Glue (layout plumbing only): contiguous reshape, native dtypes — no extra HBM pass.
    w2d = jnp.reshape(weight, (O, L))
    wm = jnp.reshape(watermark_sign, (O, 1))

    # Tile sizing: keep a single weight tile <= ~4 MiB (double-buffered -> ~8 MiB,
    # safe under every generation's scoped-VMEM default), sublane dim multiple of 8.
    w_itemsize = jnp.dtype(weight.dtype).itemsize
    max_tile_bytes = 4 * 1024 * 1024
    tile_cap = max(8, ((max_tile_bytes // max(L * w_itemsize, 1)) // 8) * 8)
    tile_o = min(max_tile_o, tile_cap, _round_up(O, 8))

    num_blocks = pl.cdiv(O, tile_o)
    splits = min(num_splits, num_blocks)      # leading "parallel" axis (v7x: 2 TCs)
    inner = pl.cdiv(num_blocks, splits)       # trailing "arbitrary" reduction axis

    def block_index(s, i):
        # Clamp so an overshooting split never requests a fully out-of-bounds block;
        # the in-kernel row mask zeroes its contribution.
        return jnp.minimum(s * inner + i, num_blocks - 1)

    kernel = functools.partial(
        _signloss_kernel, tap=tap, tile_o=tile_o, inner=inner, o_total=O
    )

    cost = pl.CostEstimate(
        flops=3 * O * L + 5 * O,
        transcendentals=0,
        bytes_accessed=int(
            O * L * w_itemsize
            + O * jnp.dtype(wm.dtype).itemsize
            + splits * 8 * 128 * 4
        ),
    )

    partials = pl.pallas_call(
        kernel,
        out_shape=jax.ShapeDtypeStruct((splits, 8, 128), jnp.float32),
        grid_spec=pltpu.PrefetchScalarGridSpec(
            num_scalar_prefetch=0,
            grid=(splits, inner),
            in_specs=[
                pl.BlockSpec((tile_o, 1), lambda s, i: (block_index(s, i), 0)),
                pl.BlockSpec((tile_o, L), lambda s, i: (block_index(s, i), 0)),
            ],
            out_specs=pl.BlockSpec((1, 8, 128), lambda s, i: (s, 0, 0)),
            scratch_shapes=[pltpu.VMEM((1, 1), jnp.float32)],
        ),
        compiler_params=pltpu.CompilerParams(
            dimension_semantics=("parallel", "arbitrary")
        ),
        cost_estimate=cost,
    )(wm, w2d)

    return jnp.sum(partials[:, 0, 0])


def _ref_sign_loss(watermark_sign, weight):
    weight_sum = jnp.sum(weight, axis=1)           # (O, kH, kW)
    weight_sign = weight_sum[:, 0, 0]              # (O,)
    wm = jnp.reshape(watermark_sign, (-1,))
    return 0.1 * jnp.sum(jnp.maximum(-wm * weight_sign + 0.1, 0.0))


if __name__ == "__main__":
    key = jax.random.PRNGKey(0)
    k1, k2, k3, k4 = jax.random.split(key, 4)

    # Small, module-consistent shapes: conv weight [O=8, C=4, kH=3, kW=3].
    O, C, kH, kW = 8, 4, 3, 3
    weight = jax.random.normal(k1, (O, C, kH, kW), dtype=jnp.float32)
    watermark_sign = jnp.sign(jax.random.uniform(k2, (O,), dtype=jnp.float32) - 0.5)
    watermark_sign = jnp.where(watermark_sign == 0, 1.0, watermark_sign)

    loss = jax.block_until_ready(sign_loss(watermark_sign, weight))
    ref = _ref_sign_loss(watermark_sign, weight)
    assert jnp.allclose(loss, ref, rtol=1e-5, atol=1e-6), (loss, ref)

    # Second check exercising the multi-block grid, 2-way split, block-index
    # clamping and partial-block masking (O not a multiple of the tile).
    O2, C2 = 20, 3
    weight2 = jax.random.normal(k3, (O2, C2, kH, kW), dtype=jnp.float32)
    wm2 = jnp.sign(jax.random.uniform(k4, (O2,), dtype=jnp.float32) - 0.5)
    wm2 = jnp.where(wm2 == 0, 1.0, wm2)

    loss2 = jax.block_until_ready(sign_loss(wm2, weight2, max_tile_o=8))
    ref2 = _ref_sign_loss(wm2, weight2)
    assert jnp.allclose(loss2, ref2, rtol=1e-5, atol=1e-6), (loss2, ref2)

    print("KERNEL_OK")
</pallas_src>

<mosaic_0001>
module attributes {stable_mosaic.version = 11 : i64} {
  func.func @_signloss_kernel(%arg0: i32, %arg1: i32, %arg2: memref<8x1xf32, #tpu.memory_space<vmem>>, %arg3: memref<8x36xf32, #tpu.memory_space<vmem>>, %arg4: memref<1x8x128xf32, #tpu.memory_space<vmem>>, %arg5: memref<1x1xf32, #tpu.memory_space<vmem>>) attributes {dimension_semantics = [#tpu.dimension_semantics<parallel>, #tpu.dimension_semantics<arbitrary>], iteration_bounds = array<i64: 1, 1>, scalar_prefetch = 0 : i64, scratch_operands = 1 : i64, tpu.core_type = #tpu.core_type<tc>, window_params = [{transform_indices = @transform_0, window_bounds = array<i64: 8, 1>}, {transform_indices = @transform_1, window_bounds = array<i64: 8, 36>}, {transform_indices = @transform_2, window_bounds = array<i64: 1, 8, 128>}]} {
    %c0_i32 = arith.constant 0 : i32
    %0 = arith.cmpi eq, %arg1, %c0_i32 : i32
    %1 = arith.extui %0 : i1 to i32
    %c0_i32_0 = arith.constant 0 : i32
    %2 = arith.cmpi ne, %1, %c0_i32_0 : i32
    scf.if %2 {
      %cst_23 = arith.constant 0.000000e+00 : f32
      %56 = vector.broadcast %cst_23 : f32 to vector<1x1xf32>
      %c0_24 = arith.constant 0 : index
      %c0_25 = arith.constant 0 : index
      %57 = vector.load %arg5[%c0_24, %c0_25] : memref<1x1xf32, #tpu.memory_space<vmem>>, vector<1x1xf32>
      tpu.vector_store %arg5[%c0_24, %c0_25], %56 {strides = array<i32>} : memref<1x1xf32, #tpu.memory_space<vmem>>, vector<1x1xf32>,
    } else {
    }
    %c0 = arith.constant 0 : index
    %c0_1 = arith.constant 0 : index
    %3 = vector.load %arg3[%c0, %c0_1] : memref<8x36xf32, #tpu.memory_space<vmem>>, vector<8x36xf32>
    %4 = tpu.iota {dimensions = array<i32: 1>} : vector<8x36xi32>
    %c9_i32 = arith.constant 9 : i32
    %c0_i32_2 = arith.constant 0 : i32
    %5 = arith.cmpi eq, %c9_i32, %c0_i32_2 : i32
    %c1_i32 = arith.constant 1 : i32
    %6 = arith.select %5, %c1_i32, %c9_i32 : i32
    %7 = vector.broadcast %6 : i32 to vector<8x36xi32>
    %8 = arith.remsi %4, %7 : vector<8x36xi32>
    %c0_i32_3 = arith.constant 0 : i32
    %9 = vector.broadcast %c0_i32_3 : i32 to vector<8x36xi32>
    %10 = arith.cmpi ne, %8, %9 : vector<8x36xi32>
    %c0_i32_4 = arith.constant 0 : i32
    %11 = vector.broadcast %c0_i32_4 : i32 to vector<8x36xi32>
    %12 = arith.cmpi slt, %8, %11 : vector<8x36xi32>
    %c0_i32_5 = arith.constant 0 : i32
    %13 = arith.cmpi slt, %6, %c0_i32_5 : i32
    %14 = vector.broadcast %13 : i1 to vector<8x36xi1>
    %15 = vector.broadcast %14 : vector<8x36xi1> to vector<8x36xi1>
    %16 = arith.xori %12, %15 : vector<8x36xi1>
    %17 = arith.andi %16, %10 : vector<8x36xi1>
    %18 = vector.broadcast %6 : i32 to vector<8x36xi32>
    %19 = arith.addi %8, %18 : vector<8x36xi32>
    %20 = arith.select %17, %19, %8 : vector<8x36xi1>, vector<8x36xi32>
    %c0_i32_6 = arith.constant 0 : i32
    %21 = vector.broadcast %c0_i32_6 : i32 to vector<8x36xi32>
    %22 = arith.cmpi eq, %20, %21 : vector<8x36xi32>
    %cst = arith.constant 0.000000e+00 : f32
    %23 = vector.broadcast %cst : f32 to vector<8x36xf32>
    %24 = arith.select %22, %3, %23 : vector<8x36xi1>, vector<8x36xf32>
    %cst_7 = arith.constant dense<0.000000e+00> : vector<8xf32>
    %25 = vector.multi_reduction <add>, %24, %cst_7 [1] : vector<8x36xf32> to vector<8xf32>
    %26 = vector.shape_cast %25 : vector<8xf32> to vector<8x1xf32>
    %c0_8 = arith.constant 0 : index
    %c0_9 = arith.constant 0 : index
    %27 = vector.load %arg2[%c0_8, %c0_9] : memref<8x1xf32, #tpu.memory_space<vmem>>, vector<8x1xf32>
    %cst_10 = arith.constant 0.000000e+00 : f32
    %28 = vector.broadcast %cst_10 : f32 to vector<8x1xf32>
    %29 = arith.subf %28, %27 : vector<8x1xf32>
    %30 = arith.mulf %29, %26 : vector<8x1xf32>
    %cst_11 = arith.constant 1.000000e-01 : f32
    %31 = vector.broadcast %cst_11 : f32 to vector<8x1xf32>
    %32 = arith.addf %30, %31 : vector<8x1xf32>
    %cst_12 = arith.constant 0.000000e+00 : f32
    %33 = vector.broadcast %cst_12 : f32 to vector<8x1xf32>
    %34 = arith.maximumf %32, %33 : vector<8x1xf32>
    %c1_i32_13 = arith.constant 1 : i32
    %35 = arith.muli %arg0, %c1_i32_13 : i32
    %36 = arith.addi %35, %arg1 : i32
    %c8_i32 = arith.constant 8 : i32
    %37 = arith.muli %36, %c8_i32 : i32
    %38 = tpu.iota {dimensions = array<i32: 0>} : vector<8x1xi32>
    %39 = vector.broadcast %37 : i32 to vector<8x1xi32>
    %40 = arith.addi %39, %38 : vector<8x1xi32>
    %c8_i32_14 = arith.constant 8 : i32
    %41 = vector.broadcast %c8_i32_14 : i32 to vector<8x1xi32>
    %42 = arith.cmpi slt, %40, %41 : vector<8x1xi32>
    %cst_15 = arith.constant 0.000000e+00 : f32
    %43 = vector.broadcast %cst_15 : f32 to vector<8x1xf32>
    %44 = arith.select %42, %34, %43 : vector<8x1xi1>, vector<8x1xf32>
    %c0_16 = arith.constant 0 : index
    %c0_17 = arith.constant 0 : index
    %45 = vector.load %arg5[%c0_16, %c0_17] : memref<1x1xf32, #tpu.memory_space<vmem>>, vector<1x1xf32>
    %46 = vector.shape_cast %44 : vector<8x1xf32> to vector<1x8x1xf32>
    %cst_18 = arith.constant dense<0.000000e+00> : vector<1xf32>
    %47 = vector.multi_reduction <add>, %46, %cst_18 [1, 2] : vector<1x8x1xf32> to vector<1xf32>
    %48 = vector.shape_cast %47 : vector<1xf32> to vector<1x1x1xf32>
    %49 = vector.extract %48[0, 0, 0] : f32 from vector<1x1x1xf32>
    %50 = vector.broadcast %49 : f32 to vector<1x1xf32>
    %51 = arith.addf %45, %50 : vector<1x1xf32>
    %c0_19 = arith.constant 0 : index
    %c0_20 = arith.constant 0 : index
    %52 = vector.load %arg5[%c0_19, %c0_20] : memref<1x1xf32, #tpu.memory_space<vmem>>, vector<1x1xf32>
    tpu.vector_store %arg5[%c0_19, %c0_20], %51 {strides = array<i32>} : memref<1x1xf32, #tpu.memory_space<vmem>>, vector<1x1xf32>,
    %c0_i32_21 = arith.constant 0 : i32
    %53 = arith.cmpi eq, %arg1, %c0_i32_21 : i32
    %54 = arith.extui %53 : i1 to i32
    %c0_i32_22 = arith.constant 0 : i32
    %55 = arith.cmpi ne, %54, %c0_i32_22 : i32
    scf.if %55 {
      %c0_23 = arith.constant 0 : index
      %c0_24 = arith.constant 0 : index
      %56 = vector.load %arg5[%c0_23, %c0_24] : memref<1x1xf32, #tpu.memory_space<vmem>>, vector<1x1xf32>
      %cst_25 = arith.constant 1.000000e-01 : f32
      %57 = vector.broadcast %cst_25 : f32 to vector<1x1xf32>
      %58 = arith.mulf %57, %56 : vector<1x1xf32>
      %59 = vector.shape_cast %58 : vector<1x1xf32> to vector<1x1x1xf32>
      %60 = vector.broadcast %59 : vector<1x1x1xf32> to vector<1x8x128xf32>
      %c0_26 = arith.constant 0 : index
      %c0_27 = arith.constant 0 : index
      %c0_28 = arith.constant 0 : index
      %61 = vector.load %arg4[%c0_26, %c0_27, %c0_28] : memref<1x8x128xf32, #tpu.memory_space<vmem>>, vector<1x8x128xf32>
      tpu.vector_store %arg4[%c0_26, %c0_27, %c0_28], %60 {strides = array<i32>} : memref<1x8x128xf32, #tpu.memory_space<vmem>>, vector<1x8x128xf32>,
    } else {
    }
    return
  }
  func.func @transform_0(%arg0: i32, %arg1: i32) -> (i32, i32) {
    %c1_i32 = arith.constant 1 : i32
    %0 = arith.muli %arg0, %c1_i32 : i32
    %1 = arith.addi %0, %arg1 : i32
    %c0_i32 = arith.constant 0 : i32
    %2 = arith.minsi %1, %c0_i32 : i32
    %c0_i32_0 = arith.constant 0 : i32
    %c0_i32_1 = arith.constant 0 : i32
    return %2, %c0_i32_0 : i32, i32
  }
  func.func @transform_1(%arg0: i32, %arg1: i32) -> (i32, i32) {
    %c1_i32 = arith.constant 1 : i32
    %0 = arith.muli %arg0, %c1_i32 : i32
    %1 = arith.addi %0, %arg1 : i32
    %c0_i32 = arith.constant 0 : i32
    %2 = arith.minsi %1, %c0_i32 : i32
    %c0_i32_0 = arith.constant 0 : i32
    %c0_i32_1 = arith.constant 0 : i32
    return %2, %c0_i32_0 : i32, i32
  }
  func.func @transform_2(%arg0: i32, %arg1: i32) -> (i32, i32, i32) {
    %c0_i32 = arith.constant 0 : i32
    %c0_i32_0 = arith.constant 0 : i32
    %c0_i32_1 = arith.constant 0 : i32
    return %arg0, %c0_i32, %c0_i32_0 : i32, i32, i32
  }
}

</mosaic_0001>

<bundles_post_ra>
// kernel: tpu_custom_call.1
= control target key start
LH: loop header
LB: loop body
LE: loop exit
PB: predicated region body
PF: predicated region fallthrough
CT: control target
= control target key end

     0   :  { %v73_v0 = vlaneseq  ;;  %s242_s0 = inlined_call_operand.vmem [shape: f32[8,1], index: 0, kind: input, shape index: {}]   ;;  %s243_s1 = inlined_call_operand.vmem [shape: f32[8,36], index: 1, kind: input, shape index: {}]   ;;  %s244_s2 = inlined_call_operand.hbm [shape: f32[1,8,128], index: 2, kind: output, shape index: {}]  }
   0x1   :  { %7 = vsyncpa [#allocation4], 0  ;;  %v72_v8 = vld [vmem:[%s243_s1] sm:$0xff]  ;;  %vm93_vm3 = vcmask 293888   ;;  %vm111_vm5 = vcmask 7168   ;;  %vm70_vm6 = vcmask 0  }
   0x2   :  { %v74_v1 = vand.u32 127, %v73_v0  ;;  %v97_v12 = vld [vmem:[%s242_s0] sm:$0xff]  ;;  %v200_v19 = vmov 0.0   ;;  %v201_v20 = vmov 0   ;;  %v133_v31 = vshrl.u32 %v73_v0, 7  ;;  %s202_s1 = smov [#allocation3]  }
   0x3   :  { %v98_v13 = vsub.f32 0.0, %v97_v12  ;;  %71 = vst.msk [vmem:[#allocation2] sm:$0x1] %vm70_vm6, %v200_v19  ;;  %174 = vset.pattern.permute.xlu1 %v201_v20  ;;  %175 = vset.pattern.permute.xlu0 %v201_v20  ;;  %s147_s13 = sshll.u32 %s202_s1, 4  ;;  %s148_s13 = int_to_ptr.vmem [resolvable:$true] %s147_s13 }
   0x4   :  { %v218_v2 = vmul.u32.u64.low 3817748708, %v74_v1  ;;  %v219_v3 = vmul.u32.u64.high 3817748708, %v74_v1, %v218_v2  ;;  %v134_v32 = vsub.s32 0, %v133_v31  ;;  %s176_s14 = scalar_lea.vmem %s148_s13, 128  ;;  %p181_p1 = scmp.lt.s32.totalorder %s148_s13, %s148_s13 }
   0x5   :  { %p177_p0 = scmp.ne.s32.totalorder %s148_s13, %s176_s14  ;;  %p182_p2 = scmp.lt.s32.totalorder %s176_s14, %s176_s14 }
   0x6   :  { %v81_v4 = vshrl.u32 %v219_v3, 3 }
   0x7   :  { %p183_p3 = por %p182_p2, %p181_p1 }
   0x8   :  { %v82_v5 = vmul.u32 9, %v81_v4 }
   0x9   :  { %p184_p4 = pnand %p183_p3, %p177_p0 }
   0xa   :  { %v83_v6 = vsub.s32 %v74_v1, %v82_v5  ;;  %v110_v28 = vld [vmem:[#allocation2] sm:$0x1] }
   0xc   :  { %vm86_vm0 = vcmp.ne.s32.totalorder %v83_v6, 0  ;;  %vm87_vm1 = vcmp.lt.s32.totalorder %v83_v6, 0  ;;  %v89_v7 = vadd.s32 9, %v83_v6 }
   0xd   :  { %vm88_vm2 = vmand %vm87_vm1, %vm86_vm0 }
   0xe   :  { %v90_v9 = vsel %vm88_vm2, %v89_v7, %v83_v6 }
   0xf   :  { %vm91_vm4 = vcmp.eq.s32.totalorder %v90_v9, 0 }
  0x10   :  { %v92_v10 = vsel %vm91_vm4, %v72_v8, 0.0 }
  0x11   :  { %v94_v11 = vsel %vm93_vm3, %v92_v10, 0.0 }
  0x12   :  { %95 = vadd.xlane.f32.xlu0 %v94_v11 }
  0x9f   :  { %v96_v14 = vpop.xlane.xlu0 %95 }
  0xa0   :  { %v99_v15 = vmul.f32 %v98_v13, %v96_v14 }
  0xa2   :  { %v100_v16 = vadd.f32 0.1, %v99_v15 }
  0xa4   :  { %v101_v17 = vmax.f32 %v100_v16, 0.0 }
  0xa6   :  { %v112_v18 = vsel %vm111_vm5, %v101_v17, 0.0 }
  0xa7   :  { %113 = vadd.xlane.f32.xlu0 %v112_v18 }
 0x134   :  { %v114_v21 = vpop.xlane.xlu0 %113 }
 0x135   :  { %v115_v22 = vrot.slane %v114_v21, 4 }
 0x137   :  { %v116_v23 = vadd.f32 %v115_v22, %v114_v21 }
 0x139   :  { %v117_v24 = vrot.slane %v116_v23, 2 }
 0x13b   :  { %v118_v25 = vadd.f32 %v117_v24, %v116_v23 }
 0x13d   :  { %v119_v26 = vrot.slane %v118_v25, 1 }
 0x13f   :  { %v120_v27 = vadd.f32 %v119_v26, %v118_v25 }
 0x141   :  { %169 = vpush %v120_v27 }
 0x172   :  { %s170_s0 = spop %169 }
 0x173   :  { %v122_v29 = vstv %s170_s0 }
 0x174   :  { %v123_v30 = vadd.f32 %v122_v29, %v110_v28 }
 0x176   :  { %125 = vst.msk [vmem:[#allocation2] sm:$0x1] %vm70_vm6, %v123_v30 }
 0x17d   :  { %v129_v33 = vld [vmem:[#allocation2] sm:$0x1] }
 0x17e   :  { %v130_v34 = vmul.f32 0.1, %v129_v33 }
 0x180   :  { %v135_v35 = vrot.slane %v130_v34, %v134_v32 }
 0x182   :  { %137 = vperm.xlu1 %174, %v135_v35  }
 0x201   :  { %v138_v36 = vpop.permute.xlu1 %137 }
 0x202   :  { %140 = vst [vmem:[#allocation3] sm:$0xff] %v138_v36 }
 0x203   :  { %187 = shalt.err (!%p184_p4)
}
 0x204   :  { %s188_s17 = scalar_lea.hbm %s244_s2, 128 }
 0x205   :  { %p189_p5 = scmp.ne.s32.totalorder %s244_s2, %s188_s17  ;;  %p192_p6 = scmp.lt.u32.totalorder %s188_s17, %s244_s2 }
 0x207   :  { %p194_p7 = pnand %p192_p6, %p189_p5 }
 0x209   :  { %197 = shalt.err (!%p194_p7)
}
 0x20a   :  { %150 = dma.vmem_to_hbm [thread:$0]  %s148_s13, 128, %s244_s2, [#allocation4]  }
 0x20b   :  { %198 = dma.done.wait [#allocation4], 128  }
 0x20c   :  { %199 = vsyncadd [#allocation4], 4294967168 }
 0x20d   :  { %154 = vsyncpa [#allocation4], 1 }

</bundles_post_ra>
